<compile_context>
chip_gen: v7x
topology: tpu7x:2x2x1
jax: 0.10.0
libtpu: 0.0.40
codegen_flags: <defaults>
</compile_context>

<pallas_src>
import jax
import jax.numpy as jnp
from jax.experimental import pallas as pl
from jax.experimental.pallas import tpu as pltpu

# --- problem sizes from the PyTorch module -------------------------------
board_size = 10
board_representation_size = board_size * board_size          # 100
bullet_representation_size = 3
max_number_of_allies = 2
max_number_of_enemies = 1
max_number_of_bullets = max_number_of_enemies + max_number_of_allies + 1   # 4
max_number_of_tanks = max_number_of_enemies + max_number_of_allies + 1     # 4
tank_representation_size = 3

INPUT_SIZE = (board_representation_size
              + max_number_of_tanks * tank_representation_size
              + max_number_of_bullets * bullet_representation_size)        # 124
HIDDEN = 64
OUTPUT_SIZE = 6

PAD = 128          # lane-padded width for every matrix dimension
MAX_TB = 2048      # batch tile cap (multiple of 8); amortizes per-step overhead


def _round_up(n, m):
    return ((n + m - 1) // m) * m


def _cdiv(a, b):
    return -(-a // b)


def _choose_tiling(B):
    """Pick (TB, B_pad, n_steps) minimizing remainder padding.

    Forces >= 2 grid steps for large batches so v7x megacore ('parallel'
    batch axis) has work for both TensorCores; at B >= 512 the extra ~0.35us
    step overhead is noise on v5e/v6e, so no generation gating is needed.
    """
    n_steps = max(1, _cdiv(B, MAX_TB))
    if n_steps < 2 and B >= 512:
        n_steps = 2
    TB = _round_up(_cdiv(B, n_steps), 8)
    B_pad = TB * n_steps
    return TB, B_pad, n_steps


# --- Pallas kernel: the whole 3-layer MLP hot path ------------------------
def dqn_kernel(x_ref, w1_ref, b1_ref, w2_ref, b2_ref, w3_ref, b3_ref, o_ref):
    # In-kernel lane pad (124 -> 128) + bf16 cast; zero padding is exact.
    x = jnp.pad(x_ref[...], ((0, 0), (0, PAD - INPUT_SIZE))).astype(jnp.bfloat16)
    # fc1 + relu (bf16 x bf16 operands, f32 accumulate, bf16 intermediate)
    h1 = jnp.dot(x, w1_ref[...], preferred_element_type=jnp.float32)
    h1 = jnp.maximum(h1 + b1_ref[...], 0.0).astype(jnp.bfloat16)
    # fc2 + relu
    h2 = jnp.dot(h1, w2_ref[...], preferred_element_type=jnp.float32)
    h2 = jnp.maximum(h2 + b2_ref[...], 0.0).astype(jnp.bfloat16)
    # fc3 (no activation); store lane-dense bf16 slab
    out = jnp.dot(h2, w3_ref[...], preferred_element_type=jnp.float32)
    o_ref[...] = (out + b3_ref[...]).astype(o_ref.dtype)


def pack_params(params):
    """Pad f32 [in, out] weights / [1, out] biases to 128-wide slabs.

    Weights are cast to bf16 for the MXU; biases stay f32 for the epilogue.
    """
    w1, b1, w2, b2, w3, b3 = params

    def pad_w(w):
        fi, fo = w.shape
        wp = jnp.zeros((PAD, PAD), jnp.float32).at[:fi, :fo].set(w)
        return wp.astype(jnp.bfloat16)

    def pad_b(b):
        fo = b.shape[-1]
        return jnp.zeros((1, PAD), jnp.float32).at[:, :fo].set(b.reshape(1, fo))

    return (pad_w(w1), pad_b(b1), pad_w(w2), pad_b(b2), pad_w(w3), pad_b(b3))


def dqn_forward(x, packed_params):
    """x: [B, INPUT_SIZE] float32. Returns [B, OUTPUT_SIZE] float32."""
    w1, b1, w2, b2, w3, b3 = packed_params
    B = x.shape[0]
    TB, B_pad, n_steps = _choose_tiling(B)

    # Only the (tiny) batch remainder is padded host-side; pad/cast of the
    # feature dim happens inside the kernel.
    if B_pad != B:
        x = jnp.pad(x, ((0, B_pad - B), (0, 0)))

    out = pl.pallas_call(
        dqn_kernel,
        out_shape=jax.ShapeDtypeStruct((B_pad, PAD), jnp.bfloat16),
        grid=(n_steps,),
        in_specs=[
            pl.BlockSpec((TB, INPUT_SIZE), lambda i: (i, 0)),  # x: streamed f32
            pl.BlockSpec((PAD, PAD), lambda i: (0, 0)),        # w1: resident
            pl.BlockSpec((1, PAD), lambda i: (0, 0)),          # b1
            pl.BlockSpec((PAD, PAD), lambda i: (0, 0)),        # w2
            pl.BlockSpec((1, PAD), lambda i: (0, 0)),          # b2
            pl.BlockSpec((PAD, PAD), lambda i: (0, 0)),        # w3
            pl.BlockSpec((1, PAD), lambda i: (0, 0)),          # b3
        ],
        out_specs=pl.BlockSpec((TB, PAD), lambda i: (i, 0)),
        compiler_params=pltpu.CompilerParams(
            dimension_semantics=("parallel",)),                # megacore on v7x
    )(x, w1, b1, w2, b2, w3, b3)

    return out[:B, :OUTPUT_SIZE].astype(jnp.float32)


def init_params(key):
    """Deterministic init matching nn.Linear's U(-1/sqrt(fan_in), 1/sqrt(fan_in)).
    Weights stored as [in, out] f32; biases as [1, out] f32 (unpadded)."""
    def linear(k, fan_in, fan_out):
        kw, kb = jax.random.split(k)
        bound = 1.0 / jnp.sqrt(fan_in)
        w = jax.random.uniform(kw, (fan_in, fan_out), jnp.float32, -bound, bound)
        b = jax.random.uniform(kb, (1, fan_out), jnp.float32, -bound, bound)
        return w, b

    k1, k2, k3 = jax.random.split(key, 3)
    w1, b1 = linear(k1, INPUT_SIZE, HIDDEN)
    w2, b2 = linear(k2, HIDDEN, HIDDEN)
    w3, b3 = linear(k3, HIDDEN, OUTPUT_SIZE)
    return (w1, b1, w2, b2, w3, b3)


def dqn_reference_f32(x, params):
    """Plain-JAX full-f32 reference of the same forward pass."""
    w1, b1, w2, b2, w3, b3 = params
    h1 = jnp.maximum(x @ w1 + b1, 0.0)
    h2 = jnp.maximum(h1 @ w2 + b2, 0.0)
    return h2 @ w3 + b3


def dqn_reference_bf16(x, params):
    """Reference mimicking the kernel: bf16 operands / f32 accumulate, bf16
    intermediates, bf16 output rounding."""
    w1, b1, w2, b2, w3, b3 = params
    bf = jnp.bfloat16

    def mm(a, w):
        return jnp.dot(a.astype(bf), w.astype(bf),
                       preferred_element_type=jnp.float32)

    h1 = jnp.maximum(mm(x, w1) + b1, 0.0).astype(bf)
    h2 = jnp.maximum(mm(h1, w2) + b2, 0.0).astype(bf)
    y = mm(h2, w3) + b3
    return y.astype(bf).astype(jnp.float32)


if __name__ == "__main__":
    key = jax.random.PRNGKey(0)
    kp, kx = jax.random.split(key)

    params = init_params(kp)
    packed = pack_params(params)

    batch = 8
    x = jax.random.normal(kx, (batch, INPUT_SIZE), jnp.float32)

    out = dqn_forward(x, packed)
    out = jax.block_until_ready(out)
    assert out.shape == (batch, OUTPUT_SIZE)

    # Tight check vs a reference that uses the same bf16 operand / output rounding.
    ref_bf16 = dqn_reference_bf16(x, params)
    assert jnp.allclose(out, ref_bf16, atol=1e-2, rtol=1e-2)

    # Looser sanity check vs the full-f32 reference (inherent bf16 operand error).
    ref_f32 = dqn_reference_f32(x, params)
    assert jnp.allclose(out, ref_f32, atol=5e-2, rtol=5e-2)

    print("KERNEL_OK")
</pallas_src>

<mosaic_0001>
module attributes {stable_mosaic.version = 11 : i64} {
  func.func @dqn_kernel(%arg0: i32, %arg1: memref<8x124xf32, #tpu.memory_space<vmem>>, %arg2: memref<128x128xbf16, #tpu.memory_space<vmem>>, %arg3: memref<1x128xf32, #tpu.memory_space<vmem>>, %arg4: memref<128x128xbf16, #tpu.memory_space<vmem>>, %arg5: memref<1x128xf32, #tpu.memory_space<vmem>>, %arg6: memref<128x128xbf16, #tpu.memory_space<vmem>>, %arg7: memref<1x128xf32, #tpu.memory_space<vmem>>, %arg8: memref<8x128xbf16, #tpu.memory_space<vmem>>) attributes {dimension_semantics = [#tpu.dimension_semantics<parallel>], iteration_bounds = array<i64: 1>, scalar_prefetch = 0 : i64, scratch_operands = 0 : i64, tpu.core_type = #tpu.core_type<tc>, window_params = [{transform_indices = @transform_0, window_bounds = array<i64: 8, 124>}, {pipeline_mode = #tpu.pipeline_mode<synchronous>, transform_indices = @transform_1, window_bounds = array<i64: 128, 128>}, {pipeline_mode = #tpu.pipeline_mode<synchronous>, transform_indices = @transform_2, window_bounds = array<i64: 1, 128>}, {pipeline_mode = #tpu.pipeline_mode<synchronous>, transform_indices = @transform_3, window_bounds = array<i64: 128, 128>}, {pipeline_mode = #tpu.pipeline_mode<synchronous>, transform_indices = @transform_4, window_bounds = array<i64: 1, 128>}, {pipeline_mode = #tpu.pipeline_mode<synchronous>, transform_indices = @transform_5, window_bounds = array<i64: 128, 128>}, {pipeline_mode = #tpu.pipeline_mode<synchronous>, transform_indices = @transform_6, window_bounds = array<i64: 1, 128>}, {transform_indices = @transform_7, window_bounds = array<i64: 8, 128>}]} {
    %c0 = arith.constant 0 : index
    %c0_0 = arith.constant 0 : index
    %0 = vector.load %arg1[%c0, %c0_0] : memref<8x124xf32, #tpu.memory_space<vmem>>, vector<8x124xf32>
    %c0_i32 = arith.constant 0 : i32
    %1 = arith.sitofp %c0_i32 : i32 to f32
    %2 = vector.broadcast %1 : f32 to vector<8x4xf32>
    %3 = tpu.concatenate %0, %2 in 1 : vector<8x124xf32>, vector<8x4xf32> -> vector<8x128xf32>
    %4 = arith.truncf %3 : vector<8x128xf32> to vector<8x128xbf16>
    %c0_1 = arith.constant 0 : index
    %c0_2 = arith.constant 0 : index
    %5 = vector.load %arg2[%c0_1, %c0_2] : memref<128x128xbf16, #tpu.memory_space<vmem>>, vector<128x128xbf16>
    %cst = arith.constant dense<0.000000e+00> : vector<8x128xf32>
    %6 = tpu.matmul %4, %5, %cst {dimension_numbers = #tpu.dot_dimension_numbers<[1], [0], [0], [1], [0, 0, 1, 1], [], []>} : vector<8x128xbf16>, vector<128x128xbf16>, vector<8x128xf32> -> vector<8x128xf32>
    %c0_3 = arith.constant 0 : index
    %c0_4 = arith.constant 0 : index
    %7 = vector.load %arg3[%c0_3, %c0_4] : memref<1x128xf32, #tpu.memory_space<vmem>>, vector<1x128xf32>
    %8 = vector.broadcast %7 : vector<1x128xf32> to vector<8x128xf32>
    %9 = arith.addf %6, %8 : vector<8x128xf32>
    %cst_5 = arith.constant 0.000000e+00 : f32
    %10 = vector.broadcast %cst_5 : f32 to vector<8x128xf32>
    %11 = arith.maximumf %9, %10 : vector<8x128xf32>
    %12 = arith.truncf %11 : vector<8x128xf32> to vector<8x128xbf16>
    %c0_6 = arith.constant 0 : index
    %c0_7 = arith.constant 0 : index
    %13 = vector.load %arg4[%c0_6, %c0_7] : memref<128x128xbf16, #tpu.memory_space<vmem>>, vector<128x128xbf16>
    %cst_8 = arith.constant dense<0.000000e+00> : vector<8x128xf32>
    %14 = tpu.matmul %12, %13, %cst_8 {dimension_numbers = #tpu.dot_dimension_numbers<[1], [0], [0], [1], [0, 0, 1, 1], [], []>} : vector<8x128xbf16>, vector<128x128xbf16>, vector<8x128xf32> -> vector<8x128xf32>
    %c0_9 = arith.constant 0 : index
    %c0_10 = arith.constant 0 : index
    %15 = vector.load %arg5[%c0_9, %c0_10] : memref<1x128xf32, #tpu.memory_space<vmem>>, vector<1x128xf32>
    %16 = vector.broadcast %15 : vector<1x128xf32> to vector<8x128xf32>
    %17 = arith.addf %14, %16 : vector<8x128xf32>
    %cst_11 = arith.constant 0.000000e+00 : f32
    %18 = vector.broadcast %cst_11 : f32 to vector<8x128xf32>
    %19 = arith.maximumf %17, %18 : vector<8x128xf32>
    %20 = arith.truncf %19 : vector<8x128xf32> to vector<8x128xbf16>
    %c0_12 = arith.constant 0 : index
    %c0_13 = arith.constant 0 : index
    %21 = vector.load %arg6[%c0_12, %c0_13] : memref<128x128xbf16, #tpu.memory_space<vmem>>, vector<128x128xbf16>
    %cst_14 = arith.constant dense<0.000000e+00> : vector<8x128xf32>
    %22 = tpu.matmul %20, %21, %cst_14 {dimension_numbers = #tpu.dot_dimension_numbers<[1], [0], [0], [1], [0, 0, 1, 1], [], []>} : vector<8x128xbf16>, vector<128x128xbf16>, vector<8x128xf32> -> vector<8x128xf32>
    %c0_15 = arith.constant 0 : index
    %c0_16 = arith.constant 0 : index
    %23 = vector.load %arg7[%c0_15, %c0_16] : memref<1x128xf32, #tpu.memory_space<vmem>>, vector<1x128xf32>
    %24 = vector.broadcast %23 : vector<1x128xf32> to vector<8x128xf32>
    %25 = arith.addf %22, %24 : vector<8x128xf32>
    %26 = arith.truncf %25 : vector<8x128xf32> to vector<8x128xbf16>
    %c0_17 = arith.constant 0 : index
    %c0_18 = arith.constant 0 : index
    %27 = vector.load %arg8[%c0_17, %c0_18] : memref<8x128xbf16, #tpu.memory_space<vmem>>, vector<8x128xbf16>
    tpu.vector_store %arg8[%c0_17, %c0_18], %26 {strides = array<i32>} : memref<8x128xbf16, #tpu.memory_space<vmem>>, vector<8x128xbf16>,
    return
  }
  func.func @transform_0(%arg0: i32) -> (i32, i32) {
    %c0_i32 = arith.constant 0 : i32
    %c0_i32_0 = arith.constant 0 : i32
    return %arg0, %c0_i32 : i32, i32
  }
  func.func @transform_1(%arg0: i32) -> (i32, i32) {
    %c0_i32 = arith.constant 0 : i32
    %c0_i32_0 = arith.constant 0 : i32
    %c0_i32_1 = arith.constant 0 : i32
    return %c0_i32, %c0_i32_0 : i32, i32
  }
  func.func @transform_2(%arg0: i32) -> (i32, i32) {
    %c0_i32 = arith.constant 0 : i32
    %c0_i32_0 = arith.constant 0 : i32
    %c0_i32_1 = arith.constant 0 : i32
    return %c0_i32, %c0_i32_0 : i32, i32
  }
  func.func @transform_3(%arg0: i32) -> (i32, i32) {
    %c0_i32 = arith.constant 0 : i32
    %c0_i32_0 = arith.constant 0 : i32
    %c0_i32_1 = arith.constant 0 : i32
    return %c0_i32, %c0_i32_0 : i32, i32
  }
  func.func @transform_4(%arg0: i32) -> (i32, i32) {
    %c0_i32 = arith.constant 0 : i32
    %c0_i32_0 = arith.constant 0 : i32
    %c0_i32_1 = arith.constant 0 : i32
    return %c0_i32, %c0_i32_0 : i32, i32
  }
  func.func @transform_5(%arg0: i32) -> (i32, i32) {
    %c0_i32 = arith.constant 0 : i32
    %c0_i32_0 = arith.constant 0 : i32
    %c0_i32_1 = arith.constant 0 : i32
    return %c0_i32, %c0_i32_0 : i32, i32
  }
  func.func @transform_6(%arg0: i32) -> (i32, i32) {
    %c0_i32 = arith.constant 0 : i32
    %c0_i32_0 = arith.constant 0 : i32
    %c0_i32_1 = arith.constant 0 : i32
    return %c0_i32, %c0_i32_0 : i32, i32
  }
  func.func @transform_7(%arg0: i32) -> (i32, i32) {
    %c0_i32 = arith.constant 0 : i32
    %c0_i32_0 = arith.constant 0 : i32
    return %arg0, %c0_i32 : i32, i32
  }
}

</mosaic_0001>

<bundles_post_ra>
// kernel: tpu_custom_call.1
= control target key start
LH: loop header
LB: loop body
LE: loop exit
PB: predicated region body
PF: predicated region fallthrough
CT: control target
= control target key end

     0   :  { %12 = vsyncpa [#allocation3], 0  ;;  %s866_s0 = inlined_call_operand.hbm [shape: f32[8,124], index: 0, kind: input, shape index: {}]   ;;  %s867_s1 = inlined_call_operand.hbm [shape: bf16[128,128], index: 1, kind: input, shape index: {}]   ;;  %s868_s2 = inlined_call_operand.vmem [shape: f32[1,128], index: 2, kind: input, shape index: {}]   ;;  %s869_s3 = inlined_call_operand.hbm [shape: bf16[128,128], index: 3, kind: input, shape index: {}]   ;;  %s870_s4 = inlined_call_operand.vmem [shape: f32[1,128], index: 4, kind: input, shape index: {}]   ;;  %s871_s5 = inlined_call_operand.hbm [shape: bf16[128,128], index: 5, kind: input, shape index: {}]   ;;  %s872_s6 = inlined_call_operand.vmem [shape: f32[1,128], index: 6, kind: input, shape index: {}]   ;;  %s873_s7 = inlined_call_operand.hbm [shape: bf16[8,128], index: 7, kind: output, shape index: {}]  }
   0x1   :  { %13 = vsyncpa [#allocation6], 0 }
   0x2   :  { %14 = vsyncpa [#allocation9], 0 }
   0x3   :  { %15 = vsyncpa [#allocation4], 0  ;;  %s709_s24 = smov [#allocation5]   ;;  %s591_s28 = scalar_lea.hbm %s867_s1, 1024 }
   0x4   :  { %s31_s25 = sshll.u32 %s709_s24, 4  ;;  %p592_p0 = scmp.ne.s32.totalorder %s867_s1, %s591_s28  ;;  %s32_s25 = int_to_ptr.vmem [resolvable:$true] %s31_s25 }
   0x5   :  { %p595_p1 = scmp.lt.u32.totalorder %s591_s28, %s867_s1 }
   0x7   :  { %p597_p2 = pnand %p595_p1, %p592_p0 }
   0x9   :  { %600 = shalt.err (!%p597_p2)
}
   0xa   :  { %s601_s10 = scalar_lea.vmem %s32_s25, 1024  ;;  %p606_p4 = scmp.lt.s32.totalorder %s32_s25, %s32_s25 }
   0xb   :  { %p602_p3 = scmp.ne.s32.totalorder %s32_s25, %s601_s10  ;;  %p607_p5 = scmp.lt.s32.totalorder %s601_s10, %s601_s10 }
   0xd   :  { %p608_p6 = por %p607_p5, %p606_p4 }
   0xf   :  { %p609_p7 = pnand %p608_p6, %p602_p3 }
  0x11   :  { %612 = shalt.err (!%p609_p7)
}
  0x12   :  { %s710_s11 = smov 64   ;;  %s711_s12 = smov 4  }
  0x13   :  { %37 = dma.hbm_to_vmem [thread:$0]  %s867_s1, 1024, %s32_s25, [#allocation6], %s710_s11, %s710_s11, %s711_s12  }
  0x14   :  { %s712_s15 = smov [#allocation2]   ;;  %s713_s17 = smov [#allocation7]  }
  0x15   :  { %s22_s16 = sshll.u32 %s712_s15, 4  ;;  %s45_s18 = sshll.u32 %s713_s17, 4  ;;  %s23_s16 = int_to_ptr.vmem [resolvable:$true] %s22_s16  ;;  %s46_s18 = int_to_ptr.vmem [resolvable:$true] %s45_s18 }
  0x16   :  { %s613_s21 = scalar_lea.hbm %s866_s0, 128 }
  0x17   :  { %p614_p8 = scmp.ne.s32.totalorder %s866_s0, %s613_s21  ;;  %p617_p9 = scmp.lt.u32.totalorder %s613_s21, %s866_s0 }
  0x19   :  { %p619_p10 = pnand %p617_p9, %p614_p8 }
  0x1b   :  { %622 = shalt.err (!%p619_p10)
}
  0x1c   :  { %s623_s1 = scalar_lea.vmem %s23_s16, 128  ;;  %p628_p12 = scmp.lt.s32.totalorder %s23_s16, %s23_s16 }
  0x1d   :  { %p624_p11 = scmp.ne.s32.totalorder %s23_s16, %s623_s1  ;;  %p629_p13 = scmp.lt.s32.totalorder %s623_s1, %s623_s1 }
  0x1f   :  { %p630_p0 = por %p629_p13, %p628_p12 }
  0x21   :  { %p631_p1 = pnand %p630_p0, %p624_p11 }
  0x23   :  { %634 = shalt.err (!%p631_p1)
}
  0x24   :  { %25 = dma.hbm_to_vmem [thread:$0]  %s866_s0, 128, %s23_s16, [#allocation3]  }
  0x25   :  { %s635_s30 = scalar_lea.hbm %s869_s3, 1024 }
  0x26   :  { %p636_p2 = scmp.ne.s32.totalorder %s869_s3, %s635_s30  ;;  %p639_p3 = scmp.lt.u32.totalorder %s635_s30, %s869_s3 }
  0x28   :  { %p641_p4 = pnand %p639_p3, %p636_p2 }
  0x2a   :  { %644 = shalt.err (!%p641_p4)
}
  0x2b   :  { %s645_s14 = scalar_lea.vmem %s46_s18, 1024  ;;  %p650_p6 = scmp.lt.s32.totalorder %s46_s18, %s46_s18 }
  0x2c   :  { %p646_p5 = scmp.ne.s32.totalorder %s46_s18, %s645_s14  ;;  %p651_p7 = scmp.lt.s32.totalorder %s645_s14, %s645_s14 }
  0x2e   :  { %p652_p8 = por %p651_p7, %p650_p6 }
  0x30   :  { %p653_p9 = pnand %p652_p8, %p646_p5 }
  0x32   :  { %656 = shalt.err (!%p653_p9)
}
  0x33   :  { %51 = dma.hbm_to_vmem [thread:$0]  %s869_s3, 1024, %s46_s18, [#allocation6], %s710_s11, %s710_s11, %s711_s12  }
  0x34   :  { %s714_s16 = smov [#allocation8]   ;;  %s657_s21 = scalar_lea.hbm %s871_s5, 1024 }
  0x35   :  { %s59_s17 = sshll.u32 %s714_s16, 4  ;;  %p658_p10 = scmp.ne.s32.totalorder %s871_s5, %s657_s21  ;;  %s60_s17 = int_to_ptr.vmem [resolvable:$true] %s59_s17 }
  0x36   :  { %p661_p11 = scmp.lt.u32.totalorder %s657_s21, %s871_s5 }
  0x38   :  { %p663_p12 = pnand %p661_p11, %p658_p10 }
  0x3a   :  { %666 = shalt.err (!%p663_p12)
}
  0x3b   :  { %s667_s1 = scalar_lea.vmem %s60_s17, 1024  ;;  %p672_p0 = scmp.lt.s32.totalorder %s60_s17, %s60_s17 }
  0x3c   :  { %p668_p13 = scmp.ne.s32.totalorder %s60_s17, %s667_s1  ;;  %p673_p1 = scmp.lt.s32.totalorder %s667_s1, %s667_s1 }
  0x3e   :  { %p674_p2 = por %p673_p1, %p672_p0 }
  0x40   :  { %p675_p3 = pnand %p674_p2, %p668_p13 }
  0x42   :  { %678 = shalt.err (!%p675_p3)
}
  0x43   :  { %65 = dma.hbm_to_vmem [thread:$0]  %s871_s5, 1024, %s60_s17, [#allocation9], %s710_s11, %s710_s11, %s711_s12  }
  0x44   :  { %701 = dma.done.wait [#allocation3], 128  }
  0x45   :  { %702 = vsyncadd [#allocation3], 4294967168 }
  0x46   :  { %703 = dma.done.wait [#allocation6], 2048  }
  0x47   :  { %704 = vsyncadd [#allocation6], 4294965248 }
  0x48   :  { %705 = dma.done.wait [#allocation9], 1024  }
  0x49   :  { %706 = vsyncadd [#allocation9], 4294966272  ;;  %v715_v0 = vmov 0.0   ;;  %vm716_vm0 = vmmov 0   ;;  %v567_v1 = vld [vmem:[#allocation5] sm:$0xff]   ;;  %v568_v2 = vld [vmem:[#allocation5 + $0x8] sm:$0xff]  }
  0x4a   :  { %498 = vmatprep.subr.bf16.mxu0 %v715_v0  ;;  %514 = vmatprep.mubr.msk.bf16.mxu0 %vm716_vm0, %v715_v0  ;;  %v569_v3 = vld [vmem:[#allocation5 + $0x10] sm:$0xff]   ;;  %v575_v4 = vld [vmem:[#allocation7] sm:$0xff]   ;;  %v570_v5 = vld [vmem:[#allocation5 + $0x18] sm:$0xff]   ;;  %vm82_vm1 = vcmask 1014784   ;;  %s717_s28 = smov [#allocation10]  }
  0x4b   :  { %518 = vmatprep.subr.bf16.mxu1 %v715_v0  ;;  %534 = vmatprep.mubr.msk.bf16.mxu1 %vm716_vm0, %v715_v0  ;;  %v576_v6 = vld [vmem:[#allocation7 + $0x8] sm:$0xff]   ;;  %v571_v7 = vld [vmem:[#allocation5 + $0x20] sm:$0xff]   ;;  %v577_v8 = vld [vmem:[#allocation7 + $0x10] sm:$0xff]   ;;  %s430_s29 = sshll.u32 %s717_s28, 4  ;;  %s431_s29 = int_to_ptr.vmem [resolvable:$true] %s430_s29 }
  0x4c   :  { %499 = vmatpush3.bf16.msra.mxu0 %v567_v1  ;;  %519 = vmatpush3.bf16.msra.mxu1 %v575_v4  ;;  %v572_v9 = vld [vmem:[#allocation5 + $0x28] sm:$0xff]   ;;  %v578_v10 = vld [vmem:[#allocation7 + $0x18] sm:$0xff]   ;;  %v573_v11 = vld [vmem:[#allocation5 + $0x30] sm:$0xff]   ;;  %p684_p5 = scmp.lt.s32.totalorder %s431_s29, %s431_s29 }
  0x4d   :  { %500 = vmatprep.subr.bf16.mxu0 %v715_v0  ;;  %520 = vmatprep.subr.bf16.mxu1 %v715_v0  ;;  %v579_v12 = vld [vmem:[#allocation7 + $0x20] sm:$0xff]   ;;  %v574_v13 = vld [vmem:[#allocation5 + $0x38] sm:$0xff]   ;;  %v580_v15 = vld [vmem:[#allocation7 + $0x28] sm:$0xff]  }
  0x4e   :  { %v81_v14 = vld [vmem:[#allocation2] sm:$0xff]  ;;  %vm450_vm2 = vmpackc.low %vm82_vm1, %vm82_vm1  ;;  %v581_v17 = vld [vmem:[#allocation7 + $0x30] sm:$0xff]  }
  0x4f   :  { %v451_v16 = vpack.c.bf16 %v81_v14, %v81_v14  ;;  %v582_v18 = vld [vmem:[#allocation7 + $0x38] sm:$0xff]   ;;  %v583_v19 = vld [vmem:[#allocation8] sm:$0xff]   ;;  %v584_v20 = vld [vmem:[#allocation8 + $0x8] sm:$0xff]  }
  0x50   :  { %501 = vmatpush3.bf16.msra.mxu0 %v568_v2  ;;  %521 = vmatpush3.bf16.msra.mxu1 %v576_v6  ;;  %v585_v21 = vld [vmem:[#allocation8 + $0x10] sm:$0xff]   ;;  %v586_v22 = vld [vmem:[#allocation8 + $0x18] sm:$0xff]   ;;  %v587_v23 = vld [vmem:[#allocation8 + $0x20] sm:$0xff]  }
  0x51   :  { %502 = vmatprep.subr.bf16.mxu0 %v715_v0  ;;  %522 = vmatprep.subr.bf16.mxu1 %v715_v0  ;;  %v588_v24 = vld [vmem:[#allocation8 + $0x28] sm:$0xff]   ;;  %v441_v25 = vld [vmem:[%s868_s2] ss:$0 sm:$0xff]  ;;  %v589_v33 = vld [vmem:[#allocation8 + $0x30] sm:$0xff]  }
  0x52   :  { %v590_v34 = vld [vmem:[#allocation8 + $0x38] sm:$0xff]  }
  0x53   :  { %v453_v35 = vld [vmem:[%s870_s4] ss:$0 sm:$0xff]  ;;  %s679_s4 = scalar_lea.vmem %s431_s29, 64 }
  0x54   :  { %503 = vmatpush3.bf16.msra.mxu0 %v569_v3  ;;  %523 = vmatpush3.bf16.msra.mxu1 %v577_v8  ;;  %v462_v43 = vld [vmem:[%s872_s6] ss:$0 sm:$0xff]  ;;  %p680_p4 = scmp.ne.s32.totalorder %s431_s29, %s679_s4  ;;  %p685_p6 = scmp.lt.s32.totalorder %s679_s4, %s679_s4 }
  0x55   :  { %504 = vmatprep.subr.bf16.mxu0 %v715_v0  ;;  %524 = vmatprep.subr.bf16.mxu1 %v715_v0 }
  0x56   :  { %p686_p7 = por %p685_p6, %p684_p5 }
  0x58   :  { %505 = vmatpush3.bf16.msra.mxu0 %v570_v5  ;;  %525 = vmatpush3.bf16.msra.mxu1 %v578_v10  ;;  %p687_p8 = pnand %p686_p7, %p680_p4 }
  0x59   :  { %506 = vmatprep.subr.bf16.mxu0 %v715_v0  ;;  %526 = vmatprep.subr.bf16.mxu1 %v715_v0 }
  0x5c   :  { %507 = vmatpush3.bf16.msra.mxu0 %v571_v7  ;;  %527 = vmatpush3.bf16.msra.mxu1 %v579_v12 }
  0x5d   :  { %508 = vmatprep.subr.bf16.mxu0 %v715_v0  ;;  %528 = vmatprep.subr.bf16.mxu1 %v715_v0 }
  0x60   :  { %509 = vmatpush3.bf16.msra.mxu0 %v572_v9  ;;  %529 = vmatpush3.bf16.msra.mxu1 %v580_v15 }
  0x61   :  { %510 = vmatprep.subr.bf16.mxu0 %v715_v0  ;;  %530 = vmatprep.subr.bf16.mxu1 %v715_v0 }
  0x64   :  { %511 = vmatpush3.bf16.msra.mxu0 %v573_v11  ;;  %531 = vmatpush3.bf16.msra.mxu1 %v581_v17 }
  0x65   :  { %512 = vmatprep.subr.bf16.mxu0 %v715_v0  ;;  %532 = vmatprep.subr.bf16.mxu1 %v715_v0 }
  0x68   :  { %513 = vmatpush3.bf16.msra.mxu0 %v574_v13  ;;  %533 = vmatpush3.bf16.msra.mxu1 %v582_v18 }
  0x69   :  { %538 = vmatprep.subr.bf16.mxu0 %v715_v0 }
  0x6b   :  { %515 = vmatmul.mubr.msk.bf16.vlgmr.msra.gmra.mrb[0].mxu0 %vm450_vm2, %v451_v16 }
  0x6c   :  { %554 = vmatprep.mubr.msk.bf16.mxu0 %vm716_vm0, %v715_v0  ;;  %539 = vmatpush3.bf16.msra.mxu0 %v583_v19 }
  0x6d   :  { %540 = vmatprep.subr.bf16.mxu0 %v715_v0 }
  0x70   :  { %541 = vmatpush3.bf16.msra.mxu0 %v584_v20 }
  0x71   :  { %542 = vmatprep.subr.bf16.mxu0 %v715_v0 }
  0x74   :  { %543 = vmatpush3.bf16.msra.mxu0 %v585_v21 }
  0x75   :  { %544 = vmatprep.subr.bf16.mxu0 %v715_v0 }
  0x78   :  { %545 = vmatpush3.bf16.msra.mxu0 %v586_v22 }
  0x79   :  { %546 = vmatprep.subr.bf16.mxu0 %v715_v0 }
  0x7c   :  { %547 = vmatpush3.bf16.msra.mxu0 %v587_v23 }
  0x7d   :  { %548 = vmatprep.subr.bf16.mxu0 %v715_v0 }
  0x80   :  { %549 = vmatpush3.bf16.msra.mxu0 %v588_v24 }
  0x81   :  { %550 = vmatprep.subr.bf16.mxu0 %v715_v0 }
  0x84   :  { %551 = vmatpush3.bf16.msra.mxu0 %v589_v33 }
  0x85   :  { %552 = vmatprep.subr.bf16.mxu0 %v715_v0 }
  0x88   :  { %553 = vmatpush3.bf16.msra.mxu0 %v590_v34 }
 0x13e   :  { %v190_v26 = vpop.f32.mrb[0].mxu0 }
 0x13f   :  { %v191_v27 = vadd.f32 %v441_v25, %v190_v26  ;;  %v516_v28 = vpop.f32.mrb[1].mxu0 }
 0x140   :  { %v193_v29 = vpop.f32.mrb[2].mxu0 }
 0x141   :  { %v196_v30 = vmax.f32 %v191_v27, 0.0  ;;  %v517_v31 = vpop.f32.mrb[3].mxu0 }
 0x143   :  { %v197_v32 = vpack.c.bf16 %v196_v30, %v196_v30 }
 0x145   :  { %535 = vmatmul.mubr.bf16.vlgmr.msra.gmra.mrb[0].mxu1 %v197_v32 }
 0x218   :  { %v303_v36 = vpop.f32.mrb[0].mxu1 }
 0x219   :  { %v304_v37 = vadd.f32 %v453_v35, %v303_v36  ;;  %v536_v38 = vpop.f32.mrb[1].mxu1 }
 0x21a   :  { %v306_v39 = vpop.f32.mrb[2].mxu1 }
 0x21b   :  { %v309_v40 = vmax.f32 %v304_v37, 0.0  ;;  %v537_v41 = vpop.f32.mrb[3].mxu1 }
 0x21d   :  { %v310_v42 = vpack.c.bf16 %v309_v40, %v309_v40 }
 0x21f   :  { %555 = vmatmul.mubr.bf16.vlgmr.msra.gmra.mrb[4].mxu0 %v310_v42 }
 0x2f2   :  { %v416_v44 = vpop.f32.mrb[4].mxu0 }
 0x2f3   :  { %v417_v45 = vadd.f32 %v462_v43, %v416_v44  ;;  %v556_v46 = vpop.f32.mrb[5].mxu0 }
 0x2f4   :  { %v419_v47 = vpop.f32.mrb[6].mxu0 }
 0x2f5   :  { %v422_v48 = vpack.c.bf16 %v417_v45, %v417_v45  ;;  %v557_v49 = vpop.f32.mrb[7].mxu0 }
 0x2f7   :  { %423 = vst [vmem:[#allocation10] sm:$0xf] %v422_v48 }
 0x2f8   :  { %690 = shalt.err (!%p687_p8)
}
 0x2f9   :  { %s691_s6 = scalar_lea.hbm %s873_s7, 64 }
 0x2fa   :  { %p692_p9 = scmp.ne.s32.totalorder %s873_s7, %s691_s6  ;;  %p695_p10 = scmp.lt.u32.totalorder %s691_s6, %s873_s7 }
 0x2fc   :  { %p697_p11 = pnand %p695_p10, %p692_p9 }
 0x2fe   :  { %700 = shalt.err (!%p697_p11)
}
 0x2ff   :  { %433 = dma.vmem_to_hbm [thread:$0]  %s431_s29, 64, %s873_s7, [#allocation4]  }
 0x300   :  { %707 = dma.done.wait [#allocation4], 64  }
 0x301   :  { %708 = vsyncadd [#allocation4], 4294967232 }
 0x302   :  { %437 = vsyncpa [#allocation3], 1 }
 0x303   :  { %438 = vsyncpa [#allocation6], 1 }
 0x304   :  { %439 = vsyncpa [#allocation9], 1 }
 0x305   :  { %440 = vsyncpa [#allocation4], 1 }

</bundles_post_ra>
